<compile_context>
chip_gen: v7x
topology: tpu7x:2x2x1
jax: 0.10.0
libtpu: 0.0.40
codegen_flags: <defaults>
</compile_context>

<pallas_src>
import functools

import numpy as np

import jax
import jax.numpy as jnp
from jax.experimental import pallas as pl
from jax.experimental.pallas import tpu as pltpu


# ----------------------------- in-kernel helpers -----------------------------

def _rotl(v, s, W):
    # out[j] = v[(j + s) % W]   (shift lanes "left")
    s = s % W
    if s == 0:
        return v
    return pltpu.roll(v, W - s, axis=1)


def _rotr(v, s, W):
    # out[j] = v[(j - s) % W]   (shift lanes "right")
    s = s % W
    if s == 0:
        return v
    return pltpu.roll(v, s, axis=1)


def _window_sum(v, m, W):
    # S[j] = sum_{d=0}^{m-1} v[(j + d) % W], built with O(log m) rolls (shift-doubling).
    result, result_w = None, 0
    chunk, chunk_w = v, 1
    mm = m
    while mm:
        if mm & 1:
            if result is None:
                result, result_w = chunk, chunk_w
            else:
                result = result + _rotl(chunk, result_w, W)
                result_w += chunk_w
        mm >>= 1
        if mm:
            chunk = chunk + _rotl(chunk, chunk_w, W)
            chunk_w *= 2
    return result


def _mod_const(x, d, bound):
    # Elementwise x % d for int32 x in [0, bound]; no vector integer divide needed
    # (binary conditional subtraction, unrolled at trace time).
    t = 0
    while (d << t) <= bound:
        t += 1
    for tt in range(t - 1, -1, -1):
        step = jnp.int32(d << tt)
        x = jnp.where(x >= step, x - step, x)
    return x


def _floordiv_const(x, d, bound):
    # Elementwise x // d for int32 x in [0, bound]; binary long division, no hw int div.
    q = jnp.zeros_like(x)
    t = 0
    while (d << t) <= bound:
        t += 1
    for tt in range(t - 1, -1, -1):
        step = jnp.int32(d << tt)
        take = x >= step
        q = q + jnp.where(take, jnp.int32(1 << tt), jnp.int32(0))
        x = jnp.where(take, x - step, x)
    return q


# --------------------------------- the kernel ---------------------------------

def _decompose_kernel(y_ref, out_ref, *, N, N_pad, period, half, P_sub):
    W = N_pad
    y = y_ref[...]                      # (1, W) f32; lanes [0, N) hold the series

    # ---- hot path 1: centered moving average via log-doubling window sums ----
    # even period P:  trend[n] = (S_P[n-half] + S_P[n-half+1]) * 0.5/P   (half = P/2)
    # odd  period P:  trend[n] =  S_P[n-half] / P                         (half = (P-1)/2)
    S = _window_sum(y, period, W)
    if period % 2 == 0:
        U = S + _rotl(S, 1, W)
        trend = _rotr(U, half, W) * (0.5 / period)
    else:
        trend = _rotr(S, half, W) * (1.0 / period)
    # Roll wrap-around only corrupts lanes outside [half, N-1-half]; those are exactly
    # the lanes the edge extrapolation below overwrites (or lanes >= N, sliced off).

    # ---- edge extrapolation: least-squares line fits on static O(period) slices ----
    front = half
    back = N - 1 - half
    front_last = min(front + period, back)
    back_first = max(front, back - period)

    def fit_segment(lo, hi):
        # fit y = slope*i + intercept over trend[:, lo:hi]  (centered formulation)
        m = hi - lo
        mean_i = (lo + hi - 1) / 2.0
        sxx_c = float(sum((i - mean_i) ** 2 for i in range(lo, hi)))
        seg = trend[:, lo:hi]                                            # (1, m)
        ic = (jax.lax.broadcasted_iota(jnp.int32, (1, m), 1).astype(jnp.float32)
              + (float(lo) - mean_i))
        sy = jnp.sum(seg)
        sxy_c = jnp.sum(seg * ic)
        slope = sxy_c / sxx_c
        intercept = sy / float(m) - slope * mean_i
        return slope, intercept

    k1, n1 = fit_segment(front, front_last)       # leading fit: excludes front_last
    k2, n2 = fit_segment(back_first, back + 1)    # trailing fit: INCLUDES back (statsmodels)

    lane = jax.lax.broadcasted_iota(jnp.int32, (1, W), 1)
    lane_f = lane.astype(jnp.float32)
    trend = jnp.where(lane < front, k1 * lane_f + n1, trend)
    trend = jnp.where(lane > back, k2 * lane_f + n2, trend)

    # ---- hot path 2: seasonal phase means + tiling via two small MXU matmuls ----
    # One 0/1 indicator matrix, generated in VMEM (zero HBM traffic):
    #   ind[p, i] = 1  iff  (i < N) and (i % period == p)
    detrended = y - trend                                                # (1, W)

    posmod = _mod_const(lane, period, W - 1)                             # lane % period
    posmod = jnp.where(lane < N, posmod, -1)                             # mask padded lanes
    ind = (jnp.broadcast_to(posmod, (P_sub, W)) ==
           jax.lax.broadcasted_iota(jnp.int32, (P_sub, W), 0)).astype(jnp.float32)

    # phase sums: contract the lane axis of both operands (q @ k.T pattern)
    phase_sums = jax.lax.dot_general(                                    # (1, P_sub)
        detrended, ind,
        dimension_numbers=(((1,), (1,)), ((), ())),
        precision=jax.lax.Precision.HIGHEST,
        preferred_element_type=jnp.float32)

    # per-phase counts, computed in-kernel (exact, divide-free):
    #   count_p = (N - 1 - p) // period + 1  for p < period, else 1
    p_iota = jax.lax.broadcasted_iota(jnp.int32, (1, P_sub), 1)
    counts = _floordiv_const(jnp.maximum(N - 1 - p_iota, 0), period, max(N - 1, 1)) + 1
    counts = jnp.where(p_iota < period, counts, 1).astype(jnp.float32)

    phase_means = phase_sums / counts                                    # (1, P_sub)
    grand_mean = jnp.sum(phase_means) * (1.0 / period)

    seasonal = jnp.dot(phase_means, ind,                                 # (1, W)
                       precision=jax.lax.Precision.HIGHEST,
                       preferred_element_type=jnp.float32) - grand_mean
    resid = detrended - seasonal

    # ---- single-row, lane-dense output: [trend | seasonal | resid], 128-aligned ----
    # NOTE: lanes >= N of each segment contain garbage (extrapolated trend,
    #       -grand_mean seasonal); the wrapper slices [:N].
    out_ref[:, 0:N_pad] = trend
    out_ref[:, N_pad:2 * N_pad] = seasonal
    out_ref[:, 2 * N_pad:3 * N_pad] = resid


# --------------------------------- the wrapper ---------------------------------

@functools.lru_cache(maxsize=None)
def _build_decompose_call(N, period):
    """Build (and cache) the pallas_call callable for a given (N, period)."""
    if period < 2 or period > 128:
        raise ValueError("period must be in [2, 128]")
    K = period + 1 if period % 2 == 0 else period       # statsmodels MA filter length
    half = (K - 1) // 2
    if N < 2 * half + 3:
        raise ValueError("series too short for seasonal decomposition")

    N_pad = ((N + 127) // 128) * 128                     # lane-dense width (also W)
    P_sub = max(8, ((period + 7) // 8) * 8)              # padded phase dim (sublanes)
    W = N_pad

    kernel = functools.partial(_decompose_kernel, N=N, N_pad=N_pad,
                               period=period, half=half, P_sub=P_sub)

    # cost model: window sums + indicator generation + two small MXU matmuls
    flops = (40 + 6 * P_sub) * W
    bytes_accessed = 4 * (W + 3 * N_pad)

    # VMEM footprint: indicator (P_sub, W) f32, ~dozen (1, W) temporaries, in/out slabs.
    vmem_bytes = 4 * (P_sub * W + 24 * W + 8 * N_pad)
    vmem_limit = int(min(64 * 1024 * 1024, max(4 * 1024 * 1024, 2 * vmem_bytes)))

    call = pl.pallas_call(
        kernel,
        out_shape=jax.ShapeDtypeStruct((1, 3 * N_pad), jnp.float32),
        in_specs=[pl.BlockSpec(memory_space=pltpu.MemorySpace.VMEM)],
        out_specs=pl.BlockSpec(memory_space=pltpu.MemorySpace.VMEM),
        compiler_params=pltpu.CompilerParams(vmem_limit_bytes=vmem_limit),
        cost_estimate=pl.CostEstimate(flops=int(flops), transcendentals=0,
                                      bytes_accessed=int(bytes_accessed)),
    )
    return call, N_pad


def series_decompose(x, kernel_size=25, period=12):
    """Pallas equivalent of SeriesDecompose.forward (kernel_size unused, as in the module)."""
    del kernel_size  # nn.AvgPool1d is never used by the PyTorch forward()
    orig_dtype = x.dtype
    if x.ndim == 3:
        b, f, s = x.shape
        x = x.reshape(b, f * s)
    if x.ndim != 2:
        raise ValueError("expected a 2-D or 3-D input")
    N = int(x.shape[-1])

    call, N_pad = _build_decompose_call(N, int(period))

    row0 = x[0:1, :].astype(jnp.float32)                 # (1, N): only x[0] is decomposed
    if N_pad != N:
        row0 = jnp.pad(row0, ((0, 0), (0, N_pad - N)))   # pad to a lane multiple only

    out = call(row0)                                     # (1, 3*N_pad)

    trend = out[0, :N].astype(orig_dtype)
    seasonal = out[0, N_pad:N_pad + N].astype(orig_dtype)
    resid = out[0, 2 * N_pad:2 * N_pad + N].astype(orig_dtype)
    return trend, seasonal, resid


# --------------------------- numpy float64 reference ---------------------------

def _reference_decompose(x0, period):
    """Pure numpy float64 reference (statsmodels additive decomposition math)."""
    x0 = np.asarray(x0, dtype=np.float64)
    N = x0.shape[0]
    if period % 2 == 0:
        filt = np.array([0.5] + [1.0] * (period - 1) + [0.5]) / period
    else:
        filt = np.full(period, 1.0 / period)
    K = len(filt)
    half = (K - 1) // 2
    trend = np.full(N, np.nan)
    for n in range(half, N - half):
        trend[n] = np.dot(filt, x0[n - half:n + half + 1])
    front, back = half, N - 1 - half
    npoints = period
    front_last = min(front + npoints, back)
    back_first = max(front, back - npoints)
    k1, n1 = np.polyfit(np.arange(front, front_last), trend[front:front_last], 1)
    trend[:front] = k1 * np.arange(front) + n1
    k2, n2 = np.polyfit(np.arange(back_first, back + 1), trend[back_first:back + 1], 1)
    trend[back + 1:] = k2 * np.arange(back + 1, N) + n2
    detr = x0 - trend
    pa = np.array([detr[p::period].mean() for p in range(period)])
    pa -= pa.mean()
    seasonal = np.tile(pa, N // period + 1)[:N]
    resid = detr - seasonal
    return trend, seasonal, resid


if __name__ == "__main__":
    key = jax.random.PRNGKey(0)
    batch, features, seq_len = 2, 4, 32          # N = features*seq_len = 128
    x = jax.random.normal(key, (batch, features, seq_len), dtype=jnp.float32)

    trend, seasonal, resid = series_decompose(x, kernel_size=25, period=12)
    jax.block_until_ready((trend, seasonal, resid))

    x0 = np.asarray(x.reshape(batch, -1)[0])
    assert trend.shape == seasonal.shape == resid.shape == (features * seq_len,)

    # additive decomposition must reconstruct x[0]
    np.testing.assert_allclose(np.asarray(trend) + np.asarray(seasonal) + np.asarray(resid),
                               x0, atol=1e-4)

    # direct comparison of each component against a float64 numpy reference
    t_ref, s_ref, r_ref = _reference_decompose(x0, period=12)
    np.testing.assert_allclose(np.asarray(trend), t_ref, rtol=1e-3, atol=1e-3)
    np.testing.assert_allclose(np.asarray(seasonal), s_ref, rtol=1e-3, atol=1e-3)
    np.testing.assert_allclose(np.asarray(resid), r_ref, rtol=1e-3, atol=1e-3)

    print("KERNEL_OK")
</pallas_src>

<mosaic_0001>
module attributes {stable_mosaic.version = 11 : i64} {
  func.func @_decompose_kernel(%arg0: memref<1x128xf32, #tpu.memory_space<vmem>>, %arg1: memref<1x384xf32, #tpu.memory_space<vmem>>) attributes {dimension_semantics = [], scalar_prefetch = 0 : i64, scratch_operands = 0 : i64, tpu.core_type = #tpu.core_type<tc>} {
    %c0 = arith.constant 0 : index
    %c0_0 = arith.constant 0 : index
    %0 = vector.load %arg0[%c0, %c0_0] : memref<1x128xf32, #tpu.memory_space<vmem>>, vector<1x128xf32>
    %c127_i32 = arith.constant 127 : i32
    %1 = tpu.dynamic_rotate %0 by %c127_i32 dim 1 : vector<1x128xf32>, i32 -> vector<1x128xf32>
    %2 = arith.addf %0, %1 : vector<1x128xf32>
    %c126_i32 = arith.constant 126 : i32
    %3 = tpu.dynamic_rotate %2 by %c126_i32 dim 1 : vector<1x128xf32>, i32 -> vector<1x128xf32>
    %4 = arith.addf %2, %3 : vector<1x128xf32>
    %c124_i32 = arith.constant 124 : i32
    %5 = tpu.dynamic_rotate %4 by %c124_i32 dim 1 : vector<1x128xf32>, i32 -> vector<1x128xf32>
    %6 = arith.addf %4, %5 : vector<1x128xf32>
    %c124_i32_1 = arith.constant 124 : i32
    %7 = tpu.dynamic_rotate %6 by %c124_i32_1 dim 1 : vector<1x128xf32>, i32 -> vector<1x128xf32>
    %8 = arith.addf %4, %7 : vector<1x128xf32>
    %c127_i32_2 = arith.constant 127 : i32
    %9 = tpu.dynamic_rotate %8 by %c127_i32_2 dim 1 : vector<1x128xf32>, i32 -> vector<1x128xf32>
    %10 = arith.addf %8, %9 : vector<1x128xf32>
    %c6_i32 = arith.constant 6 : i32
    %11 = tpu.dynamic_rotate %10 by %c6_i32 dim 1 : vector<1x128xf32>, i32 -> vector<1x128xf32>
    %cst = arith.constant 0.0416666679 : f32
    %12 = vector.broadcast %cst : f32 to vector<1x128xf32>
    %13 = arith.mulf %11, %12 : vector<1x128xf32>
    %14 = vector.extract_strided_slice %13 {offsets = [0, 6], sizes = [1, 12], strides = [1, 1]} : vector<1x128xf32> to vector<1x12xf32>
    %15 = tpu.iota {dimensions = array<i32: 1>} : vector<1x12xi32>
    %16 = arith.sitofp %15 : vector<1x12xi32> to vector<1x12xf32>
    %cst_3 = arith.constant -5.500000e+00 : f32
    %17 = vector.broadcast %cst_3 : f32 to vector<1x12xf32>
    %18 = arith.addf %16, %17 : vector<1x12xf32>
    %19 = vector.shape_cast %14 : vector<1x12xf32> to vector<1x1x12xf32>
    %cst_4 = arith.constant dense<0.000000e+00> : vector<1xf32>
    %20 = vector.multi_reduction <add>, %19, %cst_4 [1, 2] : vector<1x1x12xf32> to vector<1xf32>
    %21 = vector.shape_cast %20 : vector<1xf32> to vector<1x1x1xf32>
    %22 = vector.extract %21[0, 0, 0] : f32 from vector<1x1x1xf32>
    %23 = arith.mulf %14, %18 : vector<1x12xf32>
    %24 = vector.shape_cast %23 : vector<1x12xf32> to vector<1x1x12xf32>
    %cst_5 = arith.constant dense<0.000000e+00> : vector<1xf32>
    %25 = vector.multi_reduction <add>, %24, %cst_5 [1, 2] : vector<1x1x12xf32> to vector<1xf32>
    %26 = vector.shape_cast %25 : vector<1xf32> to vector<1x1x1xf32>
    %27 = vector.extract %26[0, 0, 0] : f32 from vector<1x1x1xf32>
    %cst_6 = arith.constant 1.430000e+02 : f32
    %28 = arith.divf %27, %cst_6 : f32
    %cst_7 = arith.constant 1.200000e+01 : f32
    %29 = arith.divf %22, %cst_7 : f32
    %cst_8 = arith.constant 1.150000e+01 : f32
    %30 = arith.mulf %28, %cst_8 : f32
    %31 = arith.subf %29, %30 : f32
    %32 = vector.extract_strided_slice %13 {offsets = [0, 109], sizes = [1, 13], strides = [1, 1]} : vector<1x128xf32> to vector<1x13xf32>
    %33 = tpu.iota {dimensions = array<i32: 1>} : vector<1x13xi32>
    %34 = arith.sitofp %33 : vector<1x13xi32> to vector<1x13xf32>
    %cst_9 = arith.constant -6.000000e+00 : f32
    %35 = vector.broadcast %cst_9 : f32 to vector<1x13xf32>
    %36 = arith.addf %34, %35 : vector<1x13xf32>
    %37 = vector.shape_cast %32 : vector<1x13xf32> to vector<1x1x13xf32>
    %cst_10 = arith.constant dense<0.000000e+00> : vector<1xf32>
    %38 = vector.multi_reduction <add>, %37, %cst_10 [1, 2] : vector<1x1x13xf32> to vector<1xf32>
    %39 = vector.shape_cast %38 : vector<1xf32> to vector<1x1x1xf32>
    %40 = vector.extract %39[0, 0, 0] : f32 from vector<1x1x1xf32>
    %41 = arith.mulf %32, %36 : vector<1x13xf32>
    %42 = vector.shape_cast %41 : vector<1x13xf32> to vector<1x1x13xf32>
    %cst_11 = arith.constant dense<0.000000e+00> : vector<1xf32>
    %43 = vector.multi_reduction <add>, %42, %cst_11 [1, 2] : vector<1x1x13xf32> to vector<1xf32>
    %44 = vector.shape_cast %43 : vector<1xf32> to vector<1x1x1xf32>
    %45 = vector.extract %44[0, 0, 0] : f32 from vector<1x1x1xf32>
    %cst_12 = arith.constant 1.820000e+02 : f32
    %46 = arith.divf %45, %cst_12 : f32
    %cst_13 = arith.constant 1.300000e+01 : f32
    %47 = arith.divf %40, %cst_13 : f32
    %cst_14 = arith.constant 1.150000e+02 : f32
    %48 = arith.mulf %46, %cst_14 : f32
    %49 = arith.subf %47, %48 : f32
    %50 = tpu.iota {dimensions = array<i32: 1>} : vector<1x128xi32>
    %51 = arith.sitofp %50 : vector<1x128xi32> to vector<1x128xf32>
    %c6_i32_15 = arith.constant 6 : i32
    %52 = vector.broadcast %c6_i32_15 : i32 to vector<1x128xi32>
    %53 = arith.cmpi slt, %50, %52 : vector<1x128xi32>
    %54 = vector.broadcast %28 : f32 to vector<1x128xf32>
    %55 = arith.mulf %54, %51 : vector<1x128xf32>
    %56 = vector.broadcast %31 : f32 to vector<1x128xf32>
    %57 = arith.addf %55, %56 : vector<1x128xf32>
    %58 = arith.select %53, %57, %13 : vector<1x128xi1>, vector<1x128xf32>
    %c121_i32 = arith.constant 121 : i32
    %59 = vector.broadcast %c121_i32 : i32 to vector<1x128xi32>
    %60 = arith.cmpi sgt, %50, %59 : vector<1x128xi32>
    %61 = vector.broadcast %46 : f32 to vector<1x128xf32>
    %62 = arith.mulf %61, %51 : vector<1x128xf32>
    %63 = vector.broadcast %49 : f32 to vector<1x128xf32>
    %64 = arith.addf %62, %63 : vector<1x128xf32>
    %65 = arith.select %60, %64, %58 : vector<1x128xi1>, vector<1x128xf32>
    %66 = arith.subf %0, %65 : vector<1x128xf32>
    %c96_i32 = arith.constant 96 : i32
    %67 = vector.broadcast %c96_i32 : i32 to vector<1x128xi32>
    %68 = arith.cmpi sge, %50, %67 : vector<1x128xi32>
    %c96_i32_16 = arith.constant 96 : i32
    %69 = vector.broadcast %c96_i32_16 : i32 to vector<1x128xi32>
    %70 = arith.subi %50, %69 : vector<1x128xi32>
    %71 = arith.select %68, %70, %50 : vector<1x128xi1>, vector<1x128xi32>
    %c48_i32 = arith.constant 48 : i32
    %72 = vector.broadcast %c48_i32 : i32 to vector<1x128xi32>
    %73 = arith.cmpi sge, %71, %72 : vector<1x128xi32>
    %c48_i32_17 = arith.constant 48 : i32
    %74 = vector.broadcast %c48_i32_17 : i32 to vector<1x128xi32>
    %75 = arith.subi %71, %74 : vector<1x128xi32>
    %76 = arith.select %73, %75, %71 : vector<1x128xi1>, vector<1x128xi32>
    %c24_i32 = arith.constant 24 : i32
    %77 = vector.broadcast %c24_i32 : i32 to vector<1x128xi32>
    %78 = arith.cmpi sge, %76, %77 : vector<1x128xi32>
    %c24_i32_18 = arith.constant 24 : i32
    %79 = vector.broadcast %c24_i32_18 : i32 to vector<1x128xi32>
    %80 = arith.subi %76, %79 : vector<1x128xi32>
    %81 = arith.select %78, %80, %76 : vector<1x128xi1>, vector<1x128xi32>
    %c12_i32 = arith.constant 12 : i32
    %82 = vector.broadcast %c12_i32 : i32 to vector<1x128xi32>
    %83 = arith.cmpi sge, %81, %82 : vector<1x128xi32>
    %c12_i32_19 = arith.constant 12 : i32
    %84 = vector.broadcast %c12_i32_19 : i32 to vector<1x128xi32>
    %85 = arith.subi %81, %84 : vector<1x128xi32>
    %86 = arith.select %83, %85, %81 : vector<1x128xi1>, vector<1x128xi32>
    %c128_i32 = arith.constant 128 : i32
    %87 = vector.broadcast %c128_i32 : i32 to vector<1x128xi32>
    %88 = arith.cmpi slt, %50, %87 : vector<1x128xi32>
    %c-1_i32 = arith.constant -1 : i32
    %89 = vector.broadcast %c-1_i32 : i32 to vector<1x128xi32>
    %90 = arith.select %88, %86, %89 : vector<1x128xi1>, vector<1x128xi32>
    %91 = vector.shape_cast %90 : vector<1x128xi32> to vector<1x128xi32>
    %92 = vector.broadcast %91 : vector<1x128xi32> to vector<16x128xi32>
    %93 = tpu.iota {dimensions = array<i32: 0>} : vector<16x128xi32>
    %94 = arith.cmpi eq, %92, %93 : vector<16x128xi32>
    %95 = arith.extui %94 : vector<16x128xi1> to vector<16x128xi32>
    %96 = arith.sitofp %95 : vector<16x128xi32> to vector<16x128xf32>
    %cst_20 = arith.constant dense<0.000000e+00> : vector<1x16xf32>
    %97 = tpu.matmul %66, %96, %cst_20 {dimension_numbers = #tpu.dot_dimension_numbers<[1], [1], [0], [0], [0, 0, 1, 0], [], []>, precision = #tpu.contract_precision<fp32>} : vector<1x128xf32>, vector<16x128xf32>, vector<1x16xf32> -> vector<1x16xf32>
    %98 = tpu.iota {dimensions = array<i32: 1>} : vector<1x16xi32>
    %c127_i32_21 = arith.constant 127 : i32
    %99 = vector.broadcast %c127_i32_21 : i32 to vector<1x16xi32>
    %100 = arith.subi %99, %98 : vector<1x16xi32>
    %c0_i32 = arith.constant 0 : i32
    %101 = vector.broadcast %c0_i32 : i32 to vector<1x16xi32>
    %102 = arith.maxsi %100, %101 : vector<1x16xi32>
    %c0_i32_22 = arith.constant 0 : i32
    %103 = vector.broadcast %c0_i32_22 : i32 to vector<1x16xi32>
    %c96_i32_23 = arith.constant 96 : i32
    %104 = vector.broadcast %c96_i32_23 : i32 to vector<1x16xi32>
    %105 = arith.cmpi sge, %102, %104 : vector<1x16xi32>
    %c8_i32 = arith.constant 8 : i32
    %c0_i32_24 = arith.constant 0 : i32
    %106 = vector.broadcast %c8_i32 : i32 to vector<1x16xi32>
    %107 = vector.broadcast %c0_i32_24 : i32 to vector<1x16xi32>
    %108 = arith.select %105, %106, %107 : vector<1x16xi1>, vector<1x16xi32>
    %109 = arith.addi %103, %108 : vector<1x16xi32>
    %c96_i32_25 = arith.constant 96 : i32
    %110 = vector.broadcast %c96_i32_25 : i32 to vector<1x16xi32>
    %111 = arith.subi %102, %110 : vector<1x16xi32>
    %112 = arith.select %105, %111, %102 : vector<1x16xi1>, vector<1x16xi32>
    %c48_i32_26 = arith.constant 48 : i32
    %113 = vector.broadcast %c48_i32_26 : i32 to vector<1x16xi32>
    %114 = arith.cmpi sge, %112, %113 : vector<1x16xi32>
    %c4_i32 = arith.constant 4 : i32
    %c0_i32_27 = arith.constant 0 : i32
    %115 = vector.broadcast %c4_i32 : i32 to vector<1x16xi32>
    %116 = vector.broadcast %c0_i32_27 : i32 to vector<1x16xi32>
    %117 = arith.select %114, %115, %116 : vector<1x16xi1>, vector<1x16xi32>
    %118 = arith.addi %109, %117 : vector<1x16xi32>
    %c48_i32_28 = arith.constant 48 : i32
    %119 = vector.broadcast %c48_i32_28 : i32 to vector<1x16xi32>
    %120 = arith.subi %112, %119 : vector<1x16xi32>
    %121 = arith.select %114, %120, %112 : vector<1x16xi1>, vector<1x16xi32>
    %c24_i32_29 = arith.constant 24 : i32
    %122 = vector.broadcast %c24_i32_29 : i32 to vector<1x16xi32>
    %123 = arith.cmpi sge, %121, %122 : vector<1x16xi32>
    %c2_i32 = arith.constant 2 : i32
    %c0_i32_30 = arith.constant 0 : i32
    %124 = vector.broadcast %c2_i32 : i32 to vector<1x16xi32>
    %125 = vector.broadcast %c0_i32_30 : i32 to vector<1x16xi32>
    %126 = arith.select %123, %124, %125 : vector<1x16xi1>, vector<1x16xi32>
    %127 = arith.addi %118, %126 : vector<1x16xi32>
    %c24_i32_31 = arith.constant 24 : i32
    %128 = vector.broadcast %c24_i32_31 : i32 to vector<1x16xi32>
    %129 = arith.subi %121, %128 : vector<1x16xi32>
    %130 = arith.select %123, %129, %121 : vector<1x16xi1>, vector<1x16xi32>
    %c12_i32_32 = arith.constant 12 : i32
    %131 = vector.broadcast %c12_i32_32 : i32 to vector<1x16xi32>
    %132 = arith.cmpi sge, %130, %131 : vector<1x16xi32>
    %c1_i32 = arith.constant 1 : i32
    %c0_i32_33 = arith.constant 0 : i32
    %133 = vector.broadcast %c1_i32 : i32 to vector<1x16xi32>
    %134 = vector.broadcast %c0_i32_33 : i32 to vector<1x16xi32>
    %135 = arith.select %132, %133, %134 : vector<1x16xi1>, vector<1x16xi32>
    %136 = arith.addi %127, %135 : vector<1x16xi32>
    %c1_i32_34 = arith.constant 1 : i32
    %137 = vector.broadcast %c1_i32_34 : i32 to vector<1x16xi32>
    %138 = arith.addi %136, %137 : vector<1x16xi32>
    %c12_i32_35 = arith.constant 12 : i32
    %139 = vector.broadcast %c12_i32_35 : i32 to vector<1x16xi32>
    %140 = arith.cmpi slt, %98, %139 : vector<1x16xi32>
    %c1_i32_36 = arith.constant 1 : i32
    %141 = vector.broadcast %c1_i32_36 : i32 to vector<1x16xi32>
    %142 = arith.select %140, %138, %141 : vector<1x16xi1>, vector<1x16xi32>
    %143 = arith.sitofp %142 : vector<1x16xi32> to vector<1x16xf32>
    %144 = arith.divf %97, %143 : vector<1x16xf32>
    %145 = vector.shape_cast %144 : vector<1x16xf32> to vector<1x1x16xf32>
    %cst_37 = arith.constant dense<0.000000e+00> : vector<1xf32>
    %146 = vector.multi_reduction <add>, %145, %cst_37 [1, 2] : vector<1x1x16xf32> to vector<1xf32>
    %147 = vector.shape_cast %146 : vector<1xf32> to vector<1x1x1xf32>
    %148 = vector.extract %147[0, 0, 0] : f32 from vector<1x1x1xf32>
    %cst_38 = arith.constant 0.0833333358 : f32
    %149 = arith.mulf %148, %cst_38 : f32
    %cst_39 = arith.constant dense<0.000000e+00> : vector<1x128xf32>
    %150 = tpu.matmul %144, %96, %cst_39 {dimension_numbers = #tpu.dot_dimension_numbers<[1], [0], [0], [1], [0, 0, 1, 1], [], []>, precision = #tpu.contract_precision<fp32>} : vector<1x16xf32>, vector<16x128xf32>, vector<1x128xf32> -> vector<1x128xf32>
    %151 = vector.broadcast %149 : f32 to vector<1x128xf32>
    %152 = arith.subf %150, %151 : vector<1x128xf32>
    %153 = arith.subf %66, %152 : vector<1x128xf32>
    %c0_40 = arith.constant 0 : index
    %c0_41 = arith.constant 0 : index
    %154 = vector.load %arg1[%c0_40, %c0_41] : memref<1x384xf32, #tpu.memory_space<vmem>>, vector<1x128xf32>
    tpu.vector_store %arg1[%c0_40, %c0_41], %65 {strides = array<i32>} : memref<1x384xf32, #tpu.memory_space<vmem>>, vector<1x128xf32>,
    %c0_42 = arith.constant 0 : index
    %c128 = arith.constant 128 : index
    %155 = vector.load %arg1[%c0_42, %c128] : memref<1x384xf32, #tpu.memory_space<vmem>>, vector<1x128xf32>
    tpu.vector_store %arg1[%c0_42, %c128], %152 {strides = array<i32>} : memref<1x384xf32, #tpu.memory_space<vmem>>, vector<1x128xf32>,
    %c0_43 = arith.constant 0 : index
    %c256 = arith.constant 256 : index
    %156 = vector.load %arg1[%c0_43, %c256] : memref<1x384xf32, #tpu.memory_space<vmem>>, vector<1x128xf32>
    tpu.vector_store %arg1[%c0_43, %c256], %153 {strides = array<i32>} : memref<1x384xf32, #tpu.memory_space<vmem>>, vector<1x128xf32>,
    return
  }
}

</mosaic_0001>

<bundles_post_ra>
// kernel: tpu_custom_call.1
= control target key start
LH: loop header
LB: loop body
LE: loop exit
PB: predicated region body
PF: predicated region fallthrough
CT: control target
= control target key end

     0   :  { %6 = vsyncpa [#allocation3], 0  ;;  %s1589_s0 = inlined_call_operand.hbm [shape: f32[1,128], index: 0, kind: input, shape index: {}]   ;;  %s1590_s1 = inlined_call_operand.hbm [shape: f32[1,384], index: 1, kind: output, shape index: {}]  }
   0x1   :  { %7 = vsyncpa [#allocation4], 0  ;;  %s1419_s6 = smov [#allocation2]   ;;  %s1371_s10 = scalar_lea.hbm %s1589_s0, 16 }
   0x2   :  { %s14_s7 = sshll.u32 %s1419_s6, 4  ;;  %p1372_p0 = scmp.ne.s32.totalorder %s1589_s0, %s1371_s10  ;;  %s15_s7 = int_to_ptr.vmem [resolvable:$true] %s14_s7 }
   0x3   :  { %p1375_p1 = scmp.lt.u32.totalorder %s1371_s10, %s1589_s0 }
   0x5   :  { %p1377_p2 = pnand %p1375_p1, %p1372_p0 }
   0x7   :  { %1380 = shalt.err (!%p1377_p2)
}
   0x8   :  { %s1381_s15 = scalar_lea.vmem %s15_s7, 16  ;;  %s1385_s16 = scalar_lea.vmem %s15_s7, 32 }
   0x9   :  { %p1382_p3 = scmp.ne.s32.totalorder %s15_s7, %s1381_s15  ;;  %p1386_p4 = scmp.lt.s32.totalorder %s15_s7, %s15_s7 }
   0xa   :  { %p1387_p5 = scmp.lt.s32.totalorder %s1385_s16, %s1381_s15 }
   0xc   :  { %p1388_p6 = por %p1387_p5, %p1386_p4 }
   0xe   :  { %p1389_p7 = pnand %p1388_p6, %p1382_p3 }
  0x10   :  { %1392 = shalt.err (!%p1389_p7)
}
  0x11   :  { %17 = dma.hbm_to_vmem [thread:$0]  %s1589_s0, 16, %s15_s7, [#allocation3]  }
  0x12   :  { %1415 = dma.done.wait [#allocation3], 16  }
  0x13   :  { %1416 = vsyncadd [#allocation3], 4294967280  ;;  %v1455_v0 = vld [vmem:[#allocation2] sm:$0x1]  ;;  %s1420_s19 = smov 127   ;;  %s1421_s20 = smov 126   ;;  %v40_v7 = vlaneseq }
  0x14   :  { %22 = vrot.lane.b32.xlu0 %v1455_v0, %s1420_s19  ;;  %s1422_s21 = smov 124   ;;  %s1423_s0 = smov 6   ;;  %vm48_vm0 = vcmask 90112   ;;  %vm90_vm1 = vcmask 98304   ;;  %v1427_v40 = vmov 0.0   ;;  %v1428_v52 = vmov 0.0|0.0  }
  0x15   :  { %v1460_v8 = vand.u32 127, %v40_v7  ;;  %s1424_s22 = smov 109   ;;  %s1425_s23 = smov 122   ;;  %v156_v36 = vshrl.u32 %v40_v7, 7  ;;  %1293 = vmatprep.subr.bf16.mxu0 %v1428_v52  ;;  %1290 = vmatprep.subr.bf16.mxu1 %v1428_v52  ;;  %vm1429_vm8 = vmmov 0   ;;  %vm1510_vm12 = vcmp.lt.s32.totalorder %v40_v7, 128 }
  0x16   :  { %s1426_s24 = smov 19   ;;  %1217 = vmatprep.mubr.msk.f32.mxu0 %vm1429_vm8, %v1427_v40  ;;  %1210 = vmatprep.mubr.msk.f32.mxu1 %vm1429_vm8, %v1427_v40  ;;  %v1430_v55 = vmov 1.0|1.0   ;;  %s1432_s10 = smov [#allocation5]  }
  0x17   :  { %v1463_v9 = vcvt.s32.f32 %v1460_v8  ;;  %v1149_v30 = vadd.s32 4294967200, %v1460_v8  ;;  %vm141_vm2 = vcmp.ge.s32.totalorder %v1460_v8, 96  ;;  %v157_v38 = vadd.s32 8, %v156_v36  ;;  %s1140_s11 = sshll.u32 %s1432_s10, 4  ;;  %s1141_s11 = int_to_ptr.vmem [resolvable:$true] %s1140_s11 }
  0x18   :  { %vm128_vm10 = vcmp.lt.s32.totalorder %v1460_v8, 6  ;;  %vm134_vm11 = vcmp.gt.s32.totalorder %v1460_v8, 121  ;;  %s1393_s12 = scalar_lea.vmem %s1141_s11, 48  ;;  %s1397_s13 = scalar_lea.vmem %s1141_s11, 64 }
  0x19   :  { %v43_v12 = vadd.f32 -5.5, %v1463_v9  ;;  %v86_v15 = vadd.f32 -6.0, %v1463_v9  ;;  %v143_v31 = vsel %vm141_vm2, %v1149_v30, %v1460_v8  ;;  %vm644_vm2 = vcmp.lt.s32.totalorder %v1460_v8, 12  ;;  %p1394_p8 = scmp.ne.s32.totalorder %s1141_s11, %s1393_s12  ;;  %p1398_p9 = scmp.lt.s32.totalorder %s1141_s11, %s1141_s11 }
  0x1a   :  { %v1150_v32 = vadd.s32 4294967248, %v143_v31  ;;  %vm144_vm3 = vcmp.ge.s32.totalorder %v143_v31, 48  ;;  %p1399_p10 = scmp.lt.s32.totalorder %s1397_s13, %s1393_s12 }
  0x1c   :  { %v146_v33 = vsel %vm144_vm3, %v1150_v32, %v143_v31  ;;  %vm649_vm3 = vcmask 122880   ;;  %p1400_p11 = por %p1399_p10, %p1398_p9 }
  0x1d   :  { %v1151_v34 = vadd.s32 4294967272, %v146_v33  ;;  %vm147_vm4 = vcmp.ge.s32.totalorder %v146_v33, 24 }
  0x1e   :  { %p1401_p12 = pnand %p1400_p11, %p1394_p8 }
  0x1f   :  { %v149_v35 = vsel %vm147_vm4, %v1151_v34, %v146_v33  ;;  %vm661_vm4 = vcmask 130048  }
  0x20   :  { %v1152_v37 = vadd.s32 4294967284, %v149_v35  ;;  %vm150_vm5 = vcmp.ge.s32.totalorder %v149_v35, 12 }
  0x22   :  { %v152_v39 = vsel %vm150_vm5, %v1152_v37, %v149_v35 }
  0x23   :  { %vm158_vm6 = vcmp.eq.s32.totalorder %v152_v39, %v156_v36  ;;  %vm159_vm7 = vcmp.eq.s32.totalorder %v152_v39, %v157_v38 }
  0x24   :  { %v1153_v41 = vsel %vm158_vm6, 1.0, %v1427_v40  ;;  %v1154_v42 = vsel %vm159_vm7, 1.0, %v1427_v40  ;;  %vm1495_vm9 = vmpackc.low %vm159_vm7, %vm158_vm6 }
  0x25   :  { %v243_v43 = vsub.f32 %v1153_v41, %v1153_v41  ;;  %v250_v44 = vsub.f32 %v1154_v42, %v1154_v42  ;;  %1292 = vmatpush3.bf16.xpose.msk.msra.mxu1 %vm1495_vm9, %v1430_v55 }
  0x26   :  { %1308 = vmatprep.subr.bf16.mxu1 %v1428_v52 }
  0x27   :  { %v244_v45 = vand.u32 4294901760, %v243_v43  ;;  %v251_v46 = vand.u32 4294901760, %v250_v44  ;;  %v1491_v53 = vpack.c.bf16 %v250_v44, %v243_v43 }
  0x29   :  { %v245_v47 = vsub.f32 %v243_v43, %v244_v45  ;;  %v252_v48 = vsub.f32 %v250_v44, %v251_v46  ;;  %v1503_v56 = vpack.c.bf16 %v251_v46, %v244_v45 }
  0x2b   :  { %v246_v49 = vand.u32 4294901760, %v245_v47  ;;  %v253_v50 = vand.u32 4294901760, %v252_v48  ;;  %v1431_v47 = vmov 0  }
  0x2d   :  { %v1481_v51 = vpack.c.bf16 %v253_v50, %v246_v49 }
  0x2f   :  { %1295 = vmatpush3.bf16.xpose.msra.mxu0 %v1481_v51 }
  0x30   :  { %1296 = vmatprep.subr.bf16.mxu0 %v1428_v52 }
  0x86   :  { %v23_v1 = vpop.permute.xlu0 %22 }
  0x87   :  { %v24_v2 = vadd.f32 %v23_v1, %v1455_v0 }
  0x89   :  { %25 = vrot.lane.b32.xlu0 %v24_v2, %s1421_s20 }
  0xfb   :  { %v26_v3 = vpop.permute.xlu0 %25 }
  0xfc   :  { %v27_v4 = vadd.f32 %v26_v3, %v24_v2 }
  0xfe   :  { %28 = vrot.lane.b32.xlu1 %v27_v4, %s1422_s21 }
 0x170   :  { %v29_v5 = vpop.permute.xlu1 %28 }
 0x171   :  { %v30_v6 = vadd.f32 %v29_v5, %v27_v4 }
 0x173   :  { %31 = vrot.lane.b32.xlu1 %v30_v6, %s1422_s21 }
 0x1e5   :  { %v32_v10 = vpop.permute.xlu1 %31 }
 0x1e6   :  { %v33_v11 = vadd.f32 %v32_v10, %v27_v4 }
 0x1e8   :  { %34 = vrot.lane.b32.xlu0 %v33_v11, %s1420_s19 }
 0x1ec   :  { %60 = vrot.lane.b32.xlu0 %v43_v12, %s1423_s0 }
 0x25a   :  { %v35_v13 = vpop.permute.xlu0 %34 }
 0x25b   :  { %v36_v14 = vadd.f32 %v35_v13, %v33_v11 }
 0x25d   :  { %37 = vrot.lane.b32.xlu1 %v36_v14, %s1423_s0 }
 0x25e   :  { %v61_v17 = vpop.permute.xlu0 %60 }
 0x261   :  { %102 = vrot.lane.b32.xlu1 %v86_v15, %s1424_s22 }
 0x2cf   :  { %v38_v16 = vpop.permute.xlu1 %37 }
 0x2d0   :  { %v1467_v18 = vmul.f32 0.041666668, %v38_v16 }
 0x2d2   :  { %v63_v19 = vmul.f32 %v61_v17, %v1467_v18  ;;  %45 = vrot.lane.b32.xlu0 %v1467_v18, %s1425_s23 }
 0x2d3   :  { %v103_v20 = vpop.permute.xlu1 %102 }
 0x2d4   :  { %65 = vrot.lane.b32.xlu1 %v63_v19, %s1425_s23  ;;  %v105_v21 = vmul.f32 %v103_v20, %v1467_v18 }
 0x2d6   :  { %87 = vrot.lane.b32.xlu0 %v1467_v18, %s1426_s24 }
 0x2d8   :  { %107 = vrot.lane.b32.xlu1 %v105_v21, %s1426_s24 }
 0x344   :  { %v46_v22 = vpop.permute.xlu0 %45 }
 0x345   :  { %v49_v23 = vsel %vm48_vm0, %v46_v22, 0.0 }
 0x346   :  { %v66_v24 = vpop.permute.xlu1 %65  ;;  %50 = vadd.xlane.f32.xlu0 %v49_v23 }
 0x347   :  { %v68_v25 = vsel %vm48_vm0, %v66_v24, 0.0 }
 0x348   :  { %69 = vadd.xlane.f32.xlu1 %v68_v25  ;;  %v88_v26 = vpop.permute.xlu0 %87 }
 0x349   :  { %v91_v27 = vsel %vm90_vm1, %v88_v26, 0.0 }
 0x34a   :  { %v108_v28 = vpop.permute.xlu1 %107  ;;  %92 = vadd.xlane.f32.xlu0 %v91_v27 }
 0x34b   :  { %v110_v29 = vsel %vm90_vm1, %v108_v28, 0.0 }
 0x34e   :  { %111 = vadd.xlane.f32.xlu0 %v110_v29 }
 0x3d3   :  { %v51_v57 = vpop.xlane.xlu0 %50 }
 0x3d4   :  { %v52_v58 = vrot.slane %v51_v57, 4 }
 0x3d5   :  { %v70_v59 = vpop.xlane.xlu1 %69 }
 0x3d6   :  { %v53_v60 = vadd.f32 %v52_v58, %v51_v57  ;;  %v71_v61 = vrot.slane %v70_v59, 4 }
 0x3d7   :  { %v93_v62 = vpop.xlane.xlu0 %92 }
 0x3d8   :  { %v54_v63 = vrot.slane %v53_v60, 2  ;;  %v72_v1 = vadd.f32 %v71_v61, %v70_v59  ;;  %v94_v2 = vrot.slane %v93_v62, 4 }
 0x3da   :  { %v73_v3 = vrot.slane %v72_v1, 2  ;;  %v95_v4 = vadd.f32 %v94_v2, %v93_v62  ;;  %v55_v5 = vadd.f32 %v54_v63, %v53_v60 }
 0x3db   :  { %v112_v6 = vpop.xlane.xlu0 %111 }
 0x3dc   :  { %v96_v10 = vrot.slane %v95_v4, 2  ;;  %v113_v11 = vrot.slane %v112_v6, 4  ;;  %v56_v12 = vrot.slane %v55_v5, 1  ;;  %v74_v13 = vadd.f32 %v73_v3, %v72_v1 }
 0x3de   :  { %v114_v14 = vadd.f32 %v113_v11, %v112_v6  ;;  %v57_v15 = vadd.f32 %v56_v12, %v55_v5  ;;  %v75_v16 = vrot.slane %v74_v13, 1  ;;  %v97_v17 = vadd.f32 %v96_v10, %v95_v4 }
 0x3e0   :  { %v115_v19 = vrot.slane %v114_v14, 2  ;;  %1345 = vpush %v57_v15  ;;  %v76_v20 = vadd.f32 %v75_v16, %v74_v13  ;;  %v98_v21 = vrot.slane %v97_v17, 1 }
 0x3e2   :  { %v116_v22 = vadd.f32 %v115_v19, %v114_v14  ;;  %1347 = vpush %v76_v20  ;;  %v99_v23 = vadd.f32 %v98_v21, %v97_v17 }
 0x3e4   :  { %1349 = vpush %v99_v23  ;;  %v117_v24 = vrot.slane %v116_v22, 1 }
 0x3e6   :  { %v118_v25 = vadd.f32 %v117_v24, %v116_v22 }
 0x3e8   :  { %1351 = vpush %v118_v25 }
 0x411   :  { %s1346_s25 = spop %1345 }
 0x412   :  { %s83_s28 = smul.f32 0.083333336, %s1346_s25 }
 0x413   :  { %s1348_s26 = spop %1347 }
 0x414   :  { %s80_s27 = smul.f32 0.006993007, %s1348_s26 }
 0x415   :  { %s1350_s2 = spop %1349 }
 0x416   :  { %s84_s29 = smul.f32 11.5, %s80_s27  ;;  %v129_v26 = vstv %s80_s27 }
 0x417   :  { %s125_s5 = smul.f32 0.07692308, %s1350_s2  ;;  %v130_v28 = vmul.f32 %v129_v26, %v1463_v9 }
 0x418   :  { %s85_s30 = ssub.f32 %s83_s28, %s84_s29 }
 0x419   :  { %s1352_s3 = spop %1351 }
 0x41a   :  { %s122_s4 = smul.f32 0.0054945056, %s1352_s3  ;;  %v131_v27 = vstv %s85_s30 }
 0x41b   :  { %v132_v30 = vadd.f32 %v131_v27, %v130_v28 }
 0x41c   :  { %s126_s6 = smul.f32 115.0, %s122_s4  ;;  %v135_v29 = vstv %s122_s4 }
 0x41d   :  { %v136_v31 = vmul.f32 %v135_v29, %v1463_v9  ;;  %v133_v35 = vsel %vm128_vm10, %v132_v30, %v1467_v18 }
 0x41e   :  { %s127_s7 = ssub.f32 %s125_s5, %s126_s6 }
 0x420   :  { %v137_v32 = vstv %s127_s7 }
 0x421   :  { %v138_v33 = vadd.f32 %v137_v32, %v136_v31 }
 0x423   :  { %v139_v36 = vsel %vm134_vm11, %v138_v33, %v133_v35 }
 0x424   :  { %v1516_v37 = vsub.f32 %v1455_v0, %v139_v36  ;;  %1131 = vst.msk [vmem:[#allocation5] sm:$0x1] %vm1510_vm12, %v139_v36  ;;  %v623_v0 = vsub.s32 127, %v1460_v8 }
 0x426   :  { %v231_v9 = vand.u32 4294901760, %v1516_v37  ;;  %vm624_vm13 = vcmp.gt.s32.totalorder %v623_v0, 0 }
 0x427   :  { %v625_v41 = vsel %vm624_vm13, %v623_v0, 0 }
 0x428   :  { %1218 = vmatmul.mubr.f32.vlgmr.msra.gmra.mrb[0].mxu0 %v231_v9  ;;  %v232_v38 = vsub.f32 %v1516_v37, %v231_v9  ;;  %v1161_v42 = vadd.s32 4294967200, %v625_v41  ;;  %vm626_vm14 = vcmp.ge.s32.totalorder %v625_v41, 96 }
 0x429   :  { %1298 = vmatpush3.bf16.xpose.msra.mxu0 %v1491_v53  ;;  %1224 = vmatprep.mubr.msk.f32.mxu0 %vm1429_vm8, %v1427_v40  ;;  %v627_v48 = vsel %vm626_vm14, 8, %v1431_v47 }
 0x42a   :  { %1299 = vmatprep.subr.bf16.mxu0 %v1428_v52  ;;  %v233_v7 = vand.u32 4294901760, %v232_v38  ;;  %v629_v43 = vsel %vm626_vm14, %v1161_v42, %v625_v41 }
 0x42b   :  { %v1162_v44 = vadd.s32 4294967248, %v629_v43  ;;  %vm630_vm15 = vcmp.ge.s32.totalorder %v629_v43, 48 }
 0x42c   :  { %v234_v18 = vsub.f32 %v232_v38, %v233_v7  ;;  %v631_v49 = vsel %vm630_vm15, 4, %v1431_v47 }
 0x42d   :  { %v634_v45 = vsel %vm630_vm15, %v1162_v44, %v629_v43  ;;  %v632_v57 = vadd.s32 %v631_v49, %v627_v48 }
 0x42e   :  { %v235_v39 = vand.u32 4294901760, %v234_v18  ;;  %v1163_v46 = vadd.s32 4294967272, %v634_v45  ;;  %vm635_vm0 = vcmp.ge.s32.totalorder %v634_v45, 24 }
 0x42f   :  { %v636_v58 = vsel %vm635_vm0, 2, %v1431_v47 }
 0x430   :  { %1211 = vmatmul.mubr.f32.vlgmr.msra.gmra.mrb[0].mxu1 %v235_v39  ;;  %1225 = vmatmul.mubr.f32.vlgmr.msra.gmra.mrb[0].mxu0 %v232_v38  ;;  %v639_v50 = vsel %vm635_vm0, %v1163_v46, %v634_v45  ;;  %v637_v59 = vadd.s32 %v636_v58, %v632_v57 }
 0x431   :  { %1301 = vmatpush3.bf16.xpose.msk.msra.mxu0 %vm1495_vm9, %v1430_v55  ;;  %1231 = vmatprep.mubr.msk.f32.mxu0 %vm1429_vm8, %v1427_v40  ;;  %vm640_vm1 = vcmp.ge.s32.totalorder %v639_v50, 12 }
 0x432   :  { %1302 = vmatprep.subr.bf16.mxu0 %v1428_v52  ;;  %1310 = vmatpush3.bf16.msk.msra.mxu1 %vm1495_vm9, %v1430_v55  ;;  %v641_v60 = vsel %vm640_vm1, 1, %v1431_v47 }
 0x433   :  { %1252 = vmatprep.mubr.msk.f32.mxu1 %vm1429_vm8, %v1427_v40  ;;  %1311 = vmatprep.subr.bf16.mxu1 %v1428_v52  ;;  %v642_v61 = vadd.s32 %v641_v60, %v637_v59 }
 0x435   :  { %v643_v1 = vadd.s32 1, %v642_v61 }
 0x437   :  { %v645_v2 = vsel %vm644_vm2, %v643_v1, 1 }
 0x438   :  { %1232 = vmatmul.mubr.f32.vlgmr.msra.gmra.mrb[0].mxu0 %v233_v7  ;;  %v646_v3 = vcvt.s32.f32 %v645_v2 }
 0x439   :  { %1304 = vmatpush3.bf16.xpose.msra.mxu0 %v1503_v56  ;;  %1238 = vmatprep.mubr.msk.f32.mxu0 %vm1429_vm8, %v1427_v40 }
 0x43a   :  { %1305 = vmatprep.subr.bf16.mxu0 %v1428_v52  ;;  %1369 = vrcp.f32 %v646_v3 }
 0x440   :  { %1239 = vmatmul.mubr.f32.vlgmr.msra.gmra.mrb[0].mxu0 %v231_v9 }
 0x441   :  { %1307 = vmatpush3.bf16.xpose.msk.msra.mxu0 %vm1495_vm9, %v1430_v55  ;;  %1245 = vmatprep.mubr.msk.f32.mxu0 %vm1429_vm8, %v1427_v40 }
 0x444   :  { %v1370_v4 = vpop.eup %1369 }
 0x448   :  { %1246 = vmatmul.mubr.f32.vlgmr.msra.gmra.mrb[0].mxu0 %v231_v9 }
 0x503   :  { %v237_v62 = vpop.f32.mrb[0].mxu1 }
 0x504   :  { %v1212_v63 = vpop.f32.mrb[1].mxu1 }
 0x51b   :  { %v619_v5 = vpop.f32.mrb[0].mxu0 }
 0x51c   :  { %v1326_v6 = vadd.f32 %v619_v5, %v237_v62  ;;  %v1247_v10 = vpop.f32.mrb[1].mxu0 }
 0x51e   :  { %v648_v11 = vmul.f32 %v1370_v4, %v1326_v6 }
 0x520   :  { %v650_v12 = vsel %vm649_vm3, %v648_v11, 0.0  ;;  %v663_v13 = vsel %vm661_vm4, %v648_v11, 0 }
 0x521   :  { %v732_v14 = vand.u32 4294901760, %v663_v13  ;;  %651 = vadd.xlane.f32.xlu1 %v650_v12 }
 0x523   :  { %v733_v15 = vsub.f32 %v663_v13, %v732_v14 }
 0x525   :  { %v734_v16 = vand.u32 4294901760, %v733_v15 }
 0x527   :  { %v735_v17 = vsub.f32 %v733_v15, %v734_v16 }
 0x529   :  { %v736_v19 = vand.u32 4294901760, %v735_v17 }
 0x52b   :  { %1253 = vmatmul.mubr.f32.vlgmr.msra.gmra.mrb[2].mxu1 %v736_v19 }
 0x52c   :  { %1313 = vmatpush3.bf16.msra.mxu1 %v1481_v51  ;;  %1259 = vmatprep.mubr.msk.f32.mxu1 %vm1429_vm8, %v1427_v40 }
 0x52d   :  { %1314 = vmatprep.subr.bf16.mxu1 %v1428_v52 }
 0x533   :  { %1260 = vmatmul.mubr.f32.vlgmr.msra.gmra.mrb[2].mxu1 %v732_v14 }
 0x534   :  { %1316 = vmatpush3.bf16.msra.mxu1 %v1491_v53  ;;  %1266 = vmatprep.mubr.msk.f32.mxu1 %vm1429_vm8, %v1427_v40 }
 0x535   :  { %1317 = vmatprep.subr.bf16.mxu1 %v1428_v52 }
 0x53b   :  { %1267 = vmatmul.mubr.f32.vlgmr.msra.gmra.mrb[2].mxu1 %v733_v15 }
 0x53c   :  { %1319 = vmatpush3.bf16.msk.msra.mxu1 %vm1495_vm9, %v1430_v55  ;;  %1273 = vmatprep.mubr.msk.f32.mxu1 %vm1429_vm8, %v1427_v40 }
 0x53d   :  { %1320 = vmatprep.subr.bf16.mxu1 %v1428_v52 }
 0x543   :  { %1274 = vmatmul.mubr.f32.vlgmr.msra.gmra.mrb[2].mxu1 %v734_v16 }
 0x544   :  { %1322 = vmatpush3.bf16.msra.mxu1 %v1503_v56  ;;  %1280 = vmatprep.mubr.msk.f32.mxu1 %vm1429_vm8, %v1427_v40 }
 0x545   :  { %1323 = vmatprep.subr.bf16.mxu1 %v1428_v52 }
 0x54b   :  { %1281 = vmatmul.mubr.f32.vlgmr.msra.gmra.mrb[2].mxu1 %v732_v14 }
 0x54c   :  { %1325 = vmatpush3.bf16.msk.msra.mxu1 %vm1495_vm9, %v1430_v55  ;;  %1287 = vmatprep.mubr.msk.f32.mxu1 %vm1429_vm8, %v1427_v40 }
 0x553   :  { %1288 = vmatmul.mubr.f32.vlgmr.msra.gmra.mrb[2].mxu1 %v732_v14 }
 0x5ae   :  { %v652_v8 = vpop.xlane.xlu1 %651 }
 0x5af   :  { %v653_v51 = vrot.slane %v652_v8, 4 }
 0x5b1   :  { %v654_v53 = vadd.f32 %v653_v51, %v652_v8 }
 0x5b3   :  { %v655_v20 = vrot.slane %v654_v53, 2 }
 0x5b5   :  { %v656_v21 = vadd.f32 %v655_v20, %v654_v53 }
 0x5b7   :  { %v657_v56 = vrot.slane %v656_v21, 1 }
 0x5b9   :  { %v658_v22 = vadd.f32 %v657_v56, %v656_v21 }
 0x5bb   :  { %1353 = vpush %v658_v22 }
 0x5ec   :  { %s1354_s8 = spop %1353 }
 0x5ed   :  { %s660_s9 = smul.f32 0.083333336, %s1354_s8 }
 0x5ef   :  { %v1124_v52 = vstv %s660_s9 }
 0x626   :  { %v1120_v23 = vpop.f32.mrb[2].mxu1 }
 0x627   :  { %v1125_v54 = vsub.f32 %v1120_v23, %v1124_v52  ;;  %v1289_v55 = vpop.f32.mrb[3].mxu1 }
 0x629   :  { %v1126_v24 = vsub.f32 %v1516_v37, %v1125_v54  ;;  %1132 = vst.msk [vmem:[#allocation5 + $0x1] sm:$0x1] %vm1510_vm12, %v1125_v54 }
 0x62b   :  { %1133 = vst.msk [vmem:[#allocation5 + $0x2] sm:$0x1] %vm1510_vm12, %v1126_v24 }
 0x62c   :  { %1404 = shalt.err (!%p1401_p12)
}
 0x62d   :  { %s1405_s16 = scalar_lea.hbm %s1590_s1, 48 }
 0x62e   :  { %p1406_p13 = scmp.ne.s32.totalorder %s1590_s1, %s1405_s16  ;;  %p1409_p0 = scmp.lt.u32.totalorder %s1405_s16, %s1590_s1 }
 0x630   :  { %p1411_p1 = pnand %p1409_p0, %p1406_p13 }
 0x632   :  { %1414 = shalt.err (!%p1411_p1)
}
 0x633   :  { %1143 = dma.vmem_to_hbm [thread:$0]  %s1141_s11, 48, %s1590_s1, [#allocation4]  }
 0x634   :  { %1417 = dma.done.wait [#allocation4], 48  }
 0x635   :  { %1418 = vsyncadd [#allocation4], 4294967248 }
 0x636   :  { %1147 = vsyncpa [#allocation3], 1 }
 0x637   :  { %1148 = vsyncpa [#allocation4], 1 }

</bundles_post_ra>
